<compile_context>
chip_gen: v7x
topology: tpu7x:2x2x1
jax: 0.10.0
libtpu: 0.0.40
codegen_flags: <defaults>
</compile_context>

<pallas_src>
import functools

import jax
import jax.numpy as jnp
import numpy as np
from jax.experimental import pallas as pl
from jax.experimental.pallas import tpu as pltpu


# --------------------------------------------------------------------------
# Kernels
# --------------------------------------------------------------------------
def _fused_kernel(w1t_ref, b1_ref, w2t_ref, b2_ref, x_ref, o_ref, *, inv_hw):
    """Single-pass ChannelGate on one (NB, C, HW) batch block.

    w1t_ref: (C, hidden)   first Linear weight, transposed
    b1_ref : (1, hidden)
    w2t_ref: (hidden, C)   second Linear weight, transposed
    b2_ref : (1, C)
    x_ref  : (NB, C, HW)   lane axis = flattened spatial
    o_ref  : (NB, C, HW)
    """
    xf = x_ref[...].astype(jnp.float32)                      # (NB, C, HW)

    # Global average / max pooling over the lane (spatial) axis, batched.
    avg = jnp.sum(xf, axis=-1) * inv_hw                      # (NB, C)
    mx = jnp.max(xf, axis=-1)                                # (NB, C)

    # Shared MLP on the MXU (idle otherwise); ReLU per branch, shared output
    # layer:  att = (h_avg + h_max) @ W2^T + 2*b2.
    w1t = w1t_ref[...]
    b1 = b1_ref[...]
    h_avg = jnp.maximum(
        jnp.dot(avg, w1t, preferred_element_type=jnp.float32) + b1, 0.0)
    h_max = jnp.maximum(
        jnp.dot(mx, w1t, preferred_element_type=jnp.float32) + b1, 0.0)
    att = (jnp.dot(h_avg + h_max, w2t_ref[...],
                   preferred_element_type=jnp.float32)
           + 2.0 * b2_ref[...])                              # (NB, C)

    scale = 1.0 / (1.0 + jnp.exp(-att))                      # exp on the EUP

    # Lane-dense broadcast multiply, unmasked stores when HW % 128 == 0.
    o_ref[...] = (xf * scale[:, :, None]).astype(o_ref.dtype)


def _pool_mlp_kernel(w1t_ref, b1_ref, w2t_ref, b2_ref, x_ref, scale_ref,
                     sum_sc, max_sc, *, inv_hw):
    """Fallback stage 1: HW-tiled pooling + MLP, grid = (batch, hw_tiles).

    x_ref    : (1, C, T)   one HW tile of one batch element
    scale_ref: (1, C, 1)   per-(batch, channel) gate (written at last tile)
    sum_sc   : (1, C) f32  running spatial sum   (VMEM scratch)
    max_sc   : (1, C) f32  running spatial max   (VMEM scratch)
    """
    t = pl.program_id(1)

    xf = x_ref[...].astype(jnp.float32)                      # (1, C, T)
    part_sum = jnp.sum(xf, axis=-1)                          # (1, C)
    part_max = jnp.max(xf, axis=-1)                          # (1, C)

    @pl.when(t == 0)
    def _():
        sum_sc[...] = jnp.zeros_like(sum_sc)
        max_sc[...] = jnp.full_like(max_sc, -jnp.inf)

    sum_sc[...] = sum_sc[...] + part_sum
    max_sc[...] = jnp.maximum(max_sc[...], part_max)

    @pl.when(t == pl.num_programs(1) - 1)
    def _():
        avg = sum_sc[...] * inv_hw                           # (1, C)
        mx = max_sc[...]
        w1t = w1t_ref[...]
        b1 = b1_ref[...]
        h_avg = jnp.maximum(
            jnp.dot(avg, w1t, preferred_element_type=jnp.float32) + b1, 0.0)
        h_max = jnp.maximum(
            jnp.dot(mx, w1t, preferred_element_type=jnp.float32) + b1, 0.0)
        att = (jnp.dot(h_avg + h_max, w2t_ref[...],
                       preferred_element_type=jnp.float32)
               + 2.0 * b2_ref[...])                          # (1, C)
        scale = 1.0 / (1.0 + jnp.exp(-att))
        scale_ref[...] = scale[:, :, None]                   # (1, C, 1)


def _gate_mul_kernel(scale_ref, x_ref, o_ref):
    """Fallback stage 2: x * scale, HW-tiled, grid = (batch, hw_tiles)."""
    o_ref[...] = (x_ref[...].astype(jnp.float32)
                  * scale_ref[...]).astype(o_ref.dtype)


# --------------------------------------------------------------------------
# Sizing helpers
# --------------------------------------------------------------------------
def _default_block_budget():
    """Per-grid-step byte budget for the x-in + x-out blocks (generation aware)."""
    try:
        cap = pltpu.get_tpu_info().vmem_capacity_bytes
    except Exception:
        cap = 64 << 20        # assume the smallest per-core VMEM (v7x)
    # Double-buffered in+out must stay well under the scoped limit, which
    # itself stays well under physical VMEM (v5e/v6e -> 16 MiB, v7x -> 8 MiB).
    return max(2 << 20, cap // 8)


def _vmem_limit(needed_bytes):
    """Explicit scoped-VMEM request; 48 MiB cap is safe on every generation."""
    return int(min(max(needed_bytes, 16 << 20), 48 << 20))


def _pick_batch_block(n, per_batch_bytes, budget_bytes, min_steps=4):
    """Largest divisor of n fitting the budget while keeping >= min(n, min_steps)
    grid steps (so the DMA pipeline overlaps and v7x can shard across cores)."""
    nb = max(1, min(n, budget_bytes // max(per_batch_bytes, 1)))
    nb = min(nb, max(1, n // min(n, min_steps)))
    while n % nb:
        nb -= 1
    return int(nb)


def _pick_hw_tile(hw, c, bytes_per_elem_pair, budget_bytes):
    """Largest multiple-of-128 divisor of hw whose (C, tile) in+out block fits."""
    best = None
    t = 128
    while t <= hw:
        if hw % t == 0 and c * t * bytes_per_elem_pair <= budget_bytes:
            best = t
        t += 128
    if best is None:
        best = hw   # full-extent lane block (VMEM limit is raised accordingly)
    return int(best)


# --------------------------------------------------------------------------
# Wrapper
# --------------------------------------------------------------------------
def channel_gate(x, w1, b1, w2, b2, *, block_budget_bytes=None, min_steps=4):
    """x: (N, C, H, W); w1: (hidden, C); b1: (hidden,); w2: (C, hidden);
    b2: (C,).  Returns (N, C, H, W) in x.dtype."""
    n, c, h, w = x.shape
    hw = h * w
    hidden = w1.shape[0]
    out_dtype = x.dtype

    x2 = jnp.asarray(x).reshape(n, c, hw)                 # lane-dense layout
    w1t = jnp.asarray(w1, jnp.float32).T.reshape(c, hidden)
    b1r = jnp.asarray(b1, jnp.float32).reshape(1, hidden)
    w2t = jnp.asarray(w2, jnp.float32).T.reshape(hidden, c)
    b2r = jnp.asarray(b2, jnp.float32).reshape(1, c)

    itemsize = jnp.dtype(x2.dtype).itemsize
    weights_bytes = 4 * (c * hidden + hidden + hidden * c + c)
    if block_budget_bytes is None:
        block_budget_bytes = _default_block_budget()

    per_batch_bytes = c * hw * itemsize * 2               # x in + gated out

    if per_batch_bytes <= block_budget_bytes:
        # ---------------- Fused single-pass path ----------------
        nb = _pick_batch_block(n, per_batch_bytes, block_budget_bytes,
                               min_steps=min_steps)
        x_block_bytes = nb * c * hw * itemsize
        vmem_needed = 4 * x_block_bytes + 2 * weights_bytes + (2 << 20)

        out = pl.pallas_call(
            functools.partial(_fused_kernel, inv_hw=1.0 / hw),
            out_shape=jax.ShapeDtypeStruct((n, c, hw), out_dtype),
            grid=(n // nb,),
            in_specs=[
                pl.BlockSpec((c, hidden), lambda i: (0, 0)),    # W1^T (resident)
                pl.BlockSpec((1, hidden), lambda i: (0, 0)),    # b1
                pl.BlockSpec((hidden, c), lambda i: (0, 0)),    # W2^T
                pl.BlockSpec((1, c), lambda i: (0, 0)),         # b2
                pl.BlockSpec((nb, c, hw), lambda i: (i, 0, 0)),  # x
            ],
            out_specs=pl.BlockSpec((nb, c, hw), lambda i: (i, 0, 0)),
            compiler_params=pltpu.CompilerParams(
                dimension_semantics=("parallel",),
                vmem_limit_bytes=_vmem_limit(vmem_needed)),
        )(w1t, b1r, w2t, b2r, x2)
        return out.reshape(n, c, h, w)

    # ---------------- Large-activation split path ----------------
    # (C, HW) per batch element does not fit the block budget: HW-tiled
    # pooling+MLP kernel producing per-(batch, channel) scales, then an
    # HW-tiled gating-multiply kernel.
    hw_tile = _pick_hw_tile(hw, c, 2 * itemsize, block_budget_bytes)
    n_hw = hw // hw_tile
    x_tile_bytes = c * hw_tile * itemsize

    pool_needed = 2 * x_tile_bytes + 2 * weights_bytes + (2 << 20)
    scales = pl.pallas_call(
        functools.partial(_pool_mlp_kernel, inv_hw=1.0 / hw),
        out_shape=jax.ShapeDtypeStruct((n, c, 1), jnp.float32),
        grid=(n, n_hw),
        in_specs=[
            pl.BlockSpec((c, hidden), lambda b, t: (0, 0)),
            pl.BlockSpec((1, hidden), lambda b, t: (0, 0)),
            pl.BlockSpec((hidden, c), lambda b, t: (0, 0)),
            pl.BlockSpec((1, c), lambda b, t: (0, 0)),
            pl.BlockSpec((1, c, hw_tile), lambda b, t: (b, 0, t)),
        ],
        out_specs=pl.BlockSpec((1, c, 1), lambda b, t: (b, 0, 0)),
        scratch_shapes=[pltpu.VMEM((1, c), jnp.float32),
                        pltpu.VMEM((1, c), jnp.float32)],
        compiler_params=pltpu.CompilerParams(
            dimension_semantics=("parallel", "arbitrary"),
            vmem_limit_bytes=_vmem_limit(pool_needed)),
    )(w1t, b1r, w2t, b2r, x2)

    gate_needed = 4 * x_tile_bytes + (2 << 20)
    out = pl.pallas_call(
        _gate_mul_kernel,
        out_shape=jax.ShapeDtypeStruct((n, c, hw), out_dtype),
        grid=(n, n_hw),
        in_specs=[
            pl.BlockSpec((1, c, 1), lambda b, t: (b, 0, 0)),      # scale
            pl.BlockSpec((1, c, hw_tile), lambda b, t: (b, 0, t)),  # x
        ],
        out_specs=pl.BlockSpec((1, c, hw_tile), lambda b, t: (b, 0, t)),
        compiler_params=pltpu.CompilerParams(
            dimension_semantics=("parallel", "parallel"),
            vmem_limit_bytes=_vmem_limit(gate_needed)),
    )(scales, x2)
    return out.reshape(n, c, h, w)


# --------------------------------------------------------------------------
# Pure-JAX reference (mirrors the PyTorch module)
# --------------------------------------------------------------------------
def channel_gate_ref(x, w1, b1, w2, b2):
    avg = jnp.mean(x, axis=(2, 3))                        # (N, C)
    mx = jnp.max(x, axis=(2, 3))                          # (N, C)

    def mlp(v):
        return jnp.maximum(v @ w1.T + b1, 0.0) @ w2.T + b2

    att = mlp(avg) + mlp(mx)                              # (N, C)
    scale = jax.nn.sigmoid(att)[:, :, None, None]
    return x * scale


if __name__ == "__main__":
    key = jax.random.PRNGKey(0)
    kx, k1, k2, k3, k4 = jax.random.split(key, 5)

    # gate_channels=64, reduction_ratio=16 -> hidden=4 (module defaults)
    n, c, h, w = 2, 64, 16, 16
    reduction_ratio = 16
    hidden = c // reduction_ratio

    x = jax.random.normal(kx, (n, c, h, w), dtype=jnp.float32)
    w1 = 0.3 * jax.random.normal(k1, (hidden, c), dtype=jnp.float32)
    b1 = 0.1 * jax.random.normal(k2, (hidden,), dtype=jnp.float32)
    w2 = 0.3 * jax.random.normal(k3, (c, hidden), dtype=jnp.float32)
    b2 = 0.1 * jax.random.normal(k4, (c,), dtype=jnp.float32)

    ref = jax.block_until_ready(channel_gate_ref(x, w1, b1, w2, b2))

    # Main fused path (grid = N/nb batch blocks).
    out = jax.block_until_ready(channel_gate(x, w1, b1, w2, b2))
    np.testing.assert_allclose(np.asarray(out), np.asarray(ref),
                               rtol=1e-4, atol=1e-4)

    # Force the large-activation split path (tiny budget) to exercise it too.
    out2 = jax.block_until_ready(
        channel_gate(x, w1, b1, w2, b2, block_budget_bytes=64 * 1024))
    np.testing.assert_allclose(np.asarray(out2), np.asarray(ref),
                               rtol=1e-4, atol=1e-4)

    print("KERNEL_OK")
</pallas_src>

<mosaic_0001>
module attributes {stable_mosaic.version = 11 : i64} {
  func.func @_fused_kernel(%arg0: i32, %arg1: memref<64x4xf32, #tpu.memory_space<vmem>>, %arg2: memref<1x4xf32, #tpu.memory_space<vmem>>, %arg3: memref<4x64xf32, #tpu.memory_space<vmem>>, %arg4: memref<1x64xf32, #tpu.memory_space<vmem>>, %arg5: memref<1x64x256xf32, #tpu.memory_space<vmem>>, %arg6: memref<1x64x256xf32, #tpu.memory_space<vmem>>) attributes {dimension_semantics = [#tpu.dimension_semantics<parallel>], iteration_bounds = array<i64: 2>, scalar_prefetch = 0 : i64, scratch_operands = 0 : i64, tpu.core_type = #tpu.core_type<tc>, window_params = [{pipeline_mode = #tpu.pipeline_mode<synchronous>, transform_indices = @transform_0, window_bounds = array<i64: 64, 4>}, {pipeline_mode = #tpu.pipeline_mode<synchronous>, transform_indices = @transform_1, window_bounds = array<i64: 1, 4>}, {pipeline_mode = #tpu.pipeline_mode<synchronous>, transform_indices = @transform_2, window_bounds = array<i64: 4, 64>}, {pipeline_mode = #tpu.pipeline_mode<synchronous>, transform_indices = @transform_3, window_bounds = array<i64: 1, 64>}, {transform_indices = @transform_4, window_bounds = array<i64: 1, 64, 256>}, {transform_indices = @transform_5, window_bounds = array<i64: 1, 64, 256>}]} {
    %c0 = arith.constant 0 : index
    %c0_0 = arith.constant 0 : index
    %c0_1 = arith.constant 0 : index
    %0 = vector.load %arg5[%c0, %c0_0, %c0_1] : memref<1x64x256xf32, #tpu.memory_space<vmem>>, vector<1x64x256xf32>
    %cst = arith.constant dense<0.000000e+00> : vector<1x64xf32>
    %1 = vector.multi_reduction <add>, %0, %cst [2] : vector<1x64x256xf32> to vector<1x64xf32>
    %cst_2 = arith.constant 3.906250e-03 : f32
    %2 = vector.broadcast %cst_2 : f32 to vector<1x64xf32>
    %3 = arith.mulf %1, %2 : vector<1x64xf32>
    %cst_3 = arith.constant dense<0xFF800000> : vector<1x64xf32>
    %4 = vector.multi_reduction <maximumf>, %0, %cst_3 [2] : vector<1x64x256xf32> to vector<1x64xf32>
    %c0_4 = arith.constant 0 : index
    %c0_5 = arith.constant 0 : index
    %5 = vector.load %arg1[%c0_4, %c0_5] : memref<64x4xf32, #tpu.memory_space<vmem>>, vector<64x4xf32>
    %c0_6 = arith.constant 0 : index
    %c0_7 = arith.constant 0 : index
    %6 = vector.load %arg2[%c0_6, %c0_7] : memref<1x4xf32, #tpu.memory_space<vmem>>, vector<1x4xf32>
    %cst_8 = arith.constant dense<0.000000e+00> : vector<1x4xf32>
    %7 = tpu.matmul %3, %5, %cst_8 {dimension_numbers = #tpu.dot_dimension_numbers<[1], [0], [0], [1], [0, 0, 1, 1], [], []>} : vector<1x64xf32>, vector<64x4xf32>, vector<1x4xf32> -> vector<1x4xf32>
    %8 = arith.addf %7, %6 : vector<1x4xf32>
    %cst_9 = arith.constant 0.000000e+00 : f32
    %9 = vector.broadcast %cst_9 : f32 to vector<1x4xf32>
    %10 = arith.maximumf %8, %9 : vector<1x4xf32>
    %cst_10 = arith.constant dense<0.000000e+00> : vector<1x4xf32>
    %11 = tpu.matmul %4, %5, %cst_10 {dimension_numbers = #tpu.dot_dimension_numbers<[1], [0], [0], [1], [0, 0, 1, 1], [], []>} : vector<1x64xf32>, vector<64x4xf32>, vector<1x4xf32> -> vector<1x4xf32>
    %12 = arith.addf %11, %6 : vector<1x4xf32>
    %cst_11 = arith.constant 0.000000e+00 : f32
    %13 = vector.broadcast %cst_11 : f32 to vector<1x4xf32>
    %14 = arith.maximumf %12, %13 : vector<1x4xf32>
    %15 = arith.addf %10, %14 : vector<1x4xf32>
    %c0_12 = arith.constant 0 : index
    %c0_13 = arith.constant 0 : index
    %16 = vector.load %arg3[%c0_12, %c0_13] : memref<4x64xf32, #tpu.memory_space<vmem>>, vector<4x64xf32>
    %cst_14 = arith.constant dense<0.000000e+00> : vector<1x64xf32>
    %17 = tpu.matmul %15, %16, %cst_14 {dimension_numbers = #tpu.dot_dimension_numbers<[1], [0], [0], [1], [0, 0, 1, 1], [], []>} : vector<1x4xf32>, vector<4x64xf32>, vector<1x64xf32> -> vector<1x64xf32>
    %c0_15 = arith.constant 0 : index
    %c0_16 = arith.constant 0 : index
    %18 = vector.load %arg4[%c0_15, %c0_16] : memref<1x64xf32, #tpu.memory_space<vmem>>, vector<1x64xf32>
    %cst_17 = arith.constant 2.000000e+00 : f32
    %19 = vector.broadcast %cst_17 : f32 to vector<1x64xf32>
    %20 = arith.mulf %19, %18 : vector<1x64xf32>
    %21 = arith.addf %17, %20 : vector<1x64xf32>
    %cst_18 = arith.constant 0.000000e+00 : f32
    %22 = vector.broadcast %cst_18 : f32 to vector<1x64xf32>
    %23 = arith.subf %22, %21 : vector<1x64xf32>
    %24 = math.exp %23 : vector<1x64xf32>
    %cst_19 = arith.constant 1.000000e+00 : f32
    %25 = vector.broadcast %cst_19 : f32 to vector<1x64xf32>
    %26 = arith.addf %25, %24 : vector<1x64xf32>
    %cst_20 = arith.constant 1.000000e+00 : f32
    %27 = vector.broadcast %cst_20 : f32 to vector<1x64xf32>
    %28 = arith.divf %27, %26 : vector<1x64xf32>
    %29 = vector.shape_cast %28 : vector<1x64xf32> to vector<1x64x1xf32>
    %30 = vector.broadcast %29 : vector<1x64x1xf32> to vector<1x64x256xf32>
    %31 = arith.mulf %0, %30 : vector<1x64x256xf32>
    %c0_21 = arith.constant 0 : index
    %c0_22 = arith.constant 0 : index
    %c0_23 = arith.constant 0 : index
    %32 = vector.load %arg6[%c0_21, %c0_22, %c0_23] : memref<1x64x256xf32, #tpu.memory_space<vmem>>, vector<1x64x256xf32>
    tpu.vector_store %arg6[%c0_21, %c0_22, %c0_23], %31 {strides = array<i32>} : memref<1x64x256xf32, #tpu.memory_space<vmem>>, vector<1x64x256xf32>,
    return
  }
  func.func @transform_0(%arg0: i32) -> (i32, i32) {
    %c0_i32 = arith.constant 0 : i32
    %c0_i32_0 = arith.constant 0 : i32
    %c0_i32_1 = arith.constant 0 : i32
    return %c0_i32, %c0_i32_0 : i32, i32
  }
  func.func @transform_1(%arg0: i32) -> (i32, i32) {
    %c0_i32 = arith.constant 0 : i32
    %c0_i32_0 = arith.constant 0 : i32
    %c0_i32_1 = arith.constant 0 : i32
    return %c0_i32, %c0_i32_0 : i32, i32
  }
  func.func @transform_2(%arg0: i32) -> (i32, i32) {
    %c0_i32 = arith.constant 0 : i32
    %c0_i32_0 = arith.constant 0 : i32
    %c0_i32_1 = arith.constant 0 : i32
    return %c0_i32, %c0_i32_0 : i32, i32
  }
  func.func @transform_3(%arg0: i32) -> (i32, i32) {
    %c0_i32 = arith.constant 0 : i32
    %c0_i32_0 = arith.constant 0 : i32
    %c0_i32_1 = arith.constant 0 : i32
    return %c0_i32, %c0_i32_0 : i32, i32
  }
  func.func @transform_4(%arg0: i32) -> (i32, i32, i32) {
    %c0_i32 = arith.constant 0 : i32
    %c0_i32_0 = arith.constant 0 : i32
    %c0_i32_1 = arith.constant 0 : i32
    return %arg0, %c0_i32, %c0_i32_0 : i32, i32, i32
  }
  func.func @transform_5(%arg0: i32) -> (i32, i32, i32) {
    %c0_i32 = arith.constant 0 : i32
    %c0_i32_0 = arith.constant 0 : i32
    %c0_i32_1 = arith.constant 0 : i32
    return %arg0, %c0_i32, %c0_i32_0 : i32, i32, i32
  }
}

</mosaic_0001>

<bundles_post_ra>
// kernel: tpu_custom_call.1
= control target key start
LH: loop header
LB: loop body
LE: loop exit
PB: predicated region body
PF: predicated region fallthrough
CT: control target
= control target key end

     0   :  { %10 = vsyncpa [#allocation3], 0  ;;  %s1472_s0 = inlined_call_operand.vmem [shape: f32[64,4], index: 0, kind: input, shape index: {}]   ;;  %s1473_s1 = inlined_call_operand.vmem [shape: f32[1,4], index: 1, kind: input, shape index: {}]   ;;  %s1474_s2 = inlined_call_operand.vmem [shape: f32[4,64], index: 2, kind: input, shape index: {}]   ;;  %s1475_s3 = inlined_call_operand.vmem [shape: f32[1,64], index: 3, kind: input, shape index: {}]   ;;  %s1476_s4 = inlined_call_operand.hbm [shape: f32[2,64,256], index: 4, kind: input, shape index: {}]   ;;  %s1477_s5 = inlined_call_operand.hbm [shape: f32[2,64,256], index: 5, kind: output, shape index: {}]  }
   0x1   :  { %12 = vsyncpa [#allocation3 + $0x1], 0 }
   0x2   :  { %13 = vsyncpa [#allocation4], 0 }
   0x3   :  { %15 = vsyncpa [#allocation4 + $0x1], 0  ;;  %s1124_s18 = smov 0   ;;  %s1126_s19 = smov 0  }
   0x4   :  { %s1128_s20 = smov 0   ;;  %s1130_s21 = smov 0  }
   0x5 LB: > { %s1145_s22 = sadd.s32 4294967295, %s1083_s21   ;;  %s823_s23 = sadd.s32 4294967294, %s1083_s21   ;;  %s1083_s21 = sphi %s1130_s21, %s1490_s21   ;;  %s1079_s20 = sphi %s1128_s20, %s1489_s20   ;;  %s1075_s19 = sphi %s1126_s19, %s1488_s19   ;;  %s1071_s18 = sphi %s1124_s18, %s1487_s18  }
   0x6   : > { %s1149_s24 = sadd.s32 1, %s1083_s21   ;;  %s112_s25 = sadd.s32 1, %s1079_s20 }
   0x7   : > { %s109_s26 = ssub.s32 %s1083_s21, %s1149_s24  ;;  %p119_p0 = scmp.ne.s32.totalorder %s1079_s20, %s1075_s19 }
   0x8   : > { %p110_p1 = scmp.eq.s32.totalorder %s109_s26, 0  ;;  %p120_p2 = scmp.eq.s32.totalorder %s1083_s21, 0 }
   0x9   : > { %p125_p3 = scmp.ne.s32.totalorder %s1075_s19, %s1071_s18  ;;  %p126_p4 = scmp.eq.s32.totalorder %s1145_s22, 0 }
   0xa   : > { %s1161_s27 = scalar_select %p110_p1, %s1079_s20, %s112_s25  }
   0xb   : > { %p1163_p5 = por %p120_p2, %p119_p0  ;;  %p1167_p6 = por %p126_p4, %p125_p3 }
   0xc   : > { %p149_p7 = scmp.eq.s32.totalorder %s1145_s22, 1  ;;  %p155_p8 = scmp.eq.s32.totalorder %s823_s23, 1 }
   0xd   : > { %p942_p10 = scmp.lt.s32.totalorder %s1083_s21, 2  ;;  %s187_s7 = sand.u32 1, %s1079_s20  }
   0xe   : > { %p1174_p11 = por %p149_p7, %p119_p0  ;;  %p1178_p12 = por %p155_p8, %p125_p3 }
   0xf   : > { %s841_s8 = sshll.u32 %s1083_s21, 11  ;;  %s826_s9 = sshll.u32 %s187_s7, 7 }
  0x10   : > { %s1481_s30 = scalar_select %p1174_p11, 1, 0 }
  0x11   : > { %s1482_s6 = scalar_select %p1178_p12, 1, 0 }
  0x12   : > { %s1187_s12 = scalar_lea.hbm %s1476_s4, %s841_s8  ;;  %s191_s13 = scalar_lea.vmem [#allocation2], %s826_s9 }
  0x13   : > { %s198_s14 = sshll.u32 %s191_s13, 4  ;;  %p1191_p13 = pnand %p942_p10, %p1163_p5  ;;  %s1195_s14 = int_to_ptr.vmem [resolvable:$true] %s198_s14 }
  0x14   : > { %s1197_s16 = scalar_lea.sflag [#allocation3], %s187_s7  ;;  %s987_s17 = scalar_lea.hbm %s1187_s12, 2048 }
  0x15   : > { %p988_p0 = scmp.ne.s32.totalorder %s1187_s12, %s987_s17  ;;  %p989_p1 = pneg %p1191_p13 }
  0x16   : > { %s992_s26 = scalar_lea.hbm %s1476_s4, 4096  ;;  %p993_p4 = scmp.lt.u32.totalorder %s1187_s12, %s1476_s4 }
  0x17   : > { %p990_p2 = pnand %p989_p1, %p988_p0  ;;  %p994_p5 = scmp.lt.u32.totalorder %s992_s26, %s987_s17 }
  0x18   : > { %p996_p8 = scmp.lt.u32.totalorder %s987_s17, %s1187_s12 }
  0x19   : > { %p991_p3 = pneg %p990_p2  ;;  %p995_p7 = por %p994_p5, %p993_p4 }
  0x1b   : > { %p997_p10 = por %p996_p8, %p995_p7 }
  0x1d   : > { %p998_p9 = pnand %p997_p10, %p991_p3 }
  0x1f   : > { %1001 = shalt.err (!%p998_p9)
}
  0x20   : > { %s1002_s7 = scalar_lea.vmem %s1195_s14, 2048  ;;  %s1085_s9 = smov [#allocation2]  }
  0x21   : > { %p1003_p0 = scmp.ne.s32.totalorder %s1195_s14, %s1002_s7  ;;  %s1007_s10 = sshll.u32 %s1085_s9, 4  ;;  %s1008_s10 = int_to_ptr.vmem [resolvable:$false] %s1007_s10 }
  0x22   : > { %s1009_s11 = scalar_lea.vmem %s1008_s10, 4096  ;;  %p1010_p11 = scmp.lt.s32.totalorder %s1195_s14, %s1008_s10 }
  0x23   : > { %p1005_p2 = pnand %p1003_p0, %p989_p1  ;;  %p1011_p4 = scmp.lt.s32.totalorder %s1009_s11, %s1002_s7 }
  0x25   : > { %p1006_p12 = pneg %p1005_p2  ;;  %p1012_p5 = por %p1011_p4, %p1010_p11 }
  0x27   : > { %p1013_p7 = pnand %p1012_p5, %p1006_p12 }
  0x29   : > { %1016 = shalt.err (!%p1013_p7)
}
  0x2a   : > { %s1086_s13 = smov 256   ;;  %s1087_s17 = smov 16  }
  0x2b   : > { %937 = dma.hbm_to_vmem [thread:$0]  (!%p1191_p13), %s1187_s12, 2048, %s1195_s14, %s1197_s16, %s1086_s13, %s1086_s13, %s1087_s17  }
  0x2c   : > { %p829_p9 = scmp.ge.s32.totalorder %s1083_s21, 1  ;;  %p206_p1 = scmp.lt.s32.totalorder %s1083_s21, 3 }
  0x2e   : > { %p207_p3 = pnand %p829_p9, %p206_p1 }
  0x2f   : > { %s1228_s23 = sand.u32 (!%p207_p3), 1, %s1075_s19  }
  0x30   : > { %210 = sbr.rel (%p207_p3) target bundleno = 844 (0x34c), region = 40  ;;  %s830_s25 = sshll.u32 (!%p207_p3), %s1228_s23, 7 }
  0x31   : > { %s213_s26 = scalar_lea.sflag (!%p207_p3), [#allocation3], %s1228_s23  ;;  %s1234_s28 = scalar_lea.vmem (!%p207_p3), [#allocation2], %s830_s25 }
  0x37   : > { %1062 = dma.done.wait (%p1167_p6), %s213_s26, 2048  }
  0x38   : > { %1064 = vsyncadd (%p1167_p6), %s213_s26, 4294965248  ;;  %v1241_v0 = vld [vmem:[%s1234_s28 + $0x20] sm:$0xff]  ;;  %v1244_v1 = vld [vmem:[%s1234_s28 + $0x28] sm:$0xff]  ;;  %v1088_v35 = vmov 0.0|0.0   ;;  %vm1089_vm0 = vmmov 0   ;;  %v1090_v45 = vmov 0.0   ;;  %v332_v48 = vlaneseq }
  0x39   : > { %v1247_v2 = vld [vmem:[%s1234_s28] sm:$0xff]  ;;  %v265_v3 = vadd.f32 %v1244_v1, %v1241_v0  ;;  %v1252_v4 = vld [vmem:[%s1234_s28 + $0x8] sm:$0xff]  ;;  %v1255_v5 = vld [vmem:[%s1234_s28 + $0x30] sm:$0xff]  ;;  %v297_v16 = vmax.f32 %v1241_v0, %v1244_v1  ;;  %906 = vmatprep.subr.bf16.mxu0 %v1088_v35  ;;  %918 = vmatprep.subr.bf16.mxu1 %v1088_v35  ;;  %vm343_vm1 = vcmask 130112   ;;  %vm350_vm2 = vcmask 195712   ;;  %s1391_s10 = scalar_lea.vmem [#allocation5], %s830_s25 }
  0x3a   : > { %v1258_v6 = vld [vmem:[%s1234_s28 + $0x38] sm:$0xff]  ;;  %v259_v7 = vadd.f32 %v1252_v4, %v1247_v2  ;;  %v1263_v8 = vld [vmem:[%s1234_s28 + $0x10] sm:$0xff]  ;;  %v291_v13 = vmax.f32 %v1247_v2, %v1252_v4  ;;  %v1277_v14 = vld [vmem:[%s1234_s28 + $0x40] sm:$0xff]  ;;  %879 = vmatprep.mubr.msk.f32.mxu0 %vm1089_vm0, %v1090_v45  ;;  %898 = vmatprep.mubr.msk.f32.mxu1 %vm1089_vm0, %v1090_v45  ;;  %v333_v51 = vand.u32 127, %v332_v48  ;;  %v1349_v55 = vshrl.u32 %v332_v48, 7  ;;  %s842_s25 = sshll.u32 %s1145_s22, 11 }
  0x3b   : > { %v1266_v9 = vld [vmem:[%s1234_s28 + $0x18] sm:$0xff]  ;;  %266 = vadd.xlane.f32.xlu1 %v265_v3  ;;  %v268_v10 = vadd.f32 %v1258_v6, %v1255_v5  ;;  %v1280_v15 = vld [vmem:[%s1234_s28 + $0x48] sm:$0xff]  ;;  %v1287_v18 = vld [vmem:[%s1234_s28 + $0x50] sm:$0xff]  ;;  %v300_v20 = vmax.f32 %v1255_v5, %v1258_v6  ;;  %vm357_vm3 = vcmask 261312   ;;  %vm364_vm4 = vcmask 326912   ;;  %s750_s11 = sshll.u32 %s1391_s10, 4  ;;  %s1422_s26 = scalar_lea.hbm %s1477_s5, %s842_s25  ;;  %s1424_s11 = int_to_ptr.vmem [resolvable:$true] %s750_s11 }
  0x3c   : > { %260 = vadd.xlane.f32.xlu0 %v259_v7  ;;  %v262_v11 = vadd.f32 %v1266_v9, %v1263_v8  ;;  %v294_v12 = vmax.f32 %v1263_v8, %v1266_v9  ;;  %v271_v17 = vadd.f32 %v1280_v15, %v1277_v14  ;;  %v1290_v19 = vld [vmem:[%s1234_s28 + $0x58] sm:$0xff]  ;;  %v1297_v22 = vld [vmem:[%s1234_s28 + $0x60] sm:$0xff]  ;;  %v1300_v23 = vld [vmem:[%s1234_s28 + $0x68] sm:$0xff]  ;;  %v303_v24 = vmax.f32 %v1277_v14, %v1280_v15  ;;  %s737_s22 = scalar_lea.sflag [#allocation4], %s1228_s23  ;;  %p1484_p11 = scmp.ne.s32.totalorder %s1481_s30, 0 }
  0x3d   : > { %v274_v21 = vadd.f32 %v1290_v19, %v1287_v18  ;;  %v277_v25 = vadd.f32 %v1300_v23, %v1297_v22  ;;  %v1307_v26 = vld [vmem:[%s1234_s28 + $0x70] sm:$0xff]  ;;  %v1310_v27 = vld [vmem:[%s1234_s28 + $0x78] sm:$0xff]  ;;  %v306_v28 = vmax.f32 %v1287_v18, %v1290_v19  ;;  %v309_v31 = vmax.f32 %v1297_v22, %v1300_v23  ;;  %v315_v32 = vld [vmem:[%s1472_s0] sm:$0xff]  ;;  %s1017_s28 = scalar_lea.vmem %s1424_s11, 2048  ;;  %s1091_s29 = smov [#allocation5]  }
  0x3e   : > { %v280_v29 = vadd.f32 %v1310_v27, %v1307_v26  ;;  %v312_v30 = vmax.f32 %v1307_v26, %v1310_v27  ;;  %v316_v33 = vld [vmem:[%s1472_s0 + $0x8] sm:$0xff]  ;;  %v317_v36 = vld [vmem:[%s1472_s0 + $0x10] sm:$0xff]  ;;  %v318_v37 = vld [vmem:[%s1472_s0 + $0x18] sm:$0xff]  ;;  %v338_v52 = vadd.s32 4294967288, %v333_v51  ;;  %v345_v59 = vadd.s32 4294967280, %v333_v51  ;;  %p1018_p6 = scmp.ne.s32.totalorder %s1424_s11, %s1017_s28  ;;  %s1021_s12 = sshll.u32 %s1091_s29, 4  ;;  %s1022_s12 = int_to_ptr.vmem [resolvable:$false] %s1021_s12 }
  0x3f   : > { %269 = vadd.xlane.f32.xlu1 %v268_v10  ;;  %v907_v34 = vpack.c.bf16 %v316_v33, %v315_v32  ;;  %v910_v38 = vpack.c.bf16 %v318_v37, %v317_v36  ;;  %v319_v39 = vld [vmem:[%s1472_s0 + $0x20] sm:$0xff]  ;;  %v320_v40 = vld [vmem:[%s1472_s0 + $0x28] sm:$0xff]  ;;  %v321_v42 = vld [vmem:[%s1472_s0 + $0x30] sm:$0xff]  ;;  %v336_v61 = vsub.s32 %v333_v51, %v1349_v55  ;;  %v352_v63 = vadd.s32 4294967272, %v333_v51  ;;  %s1023_s14 = scalar_lea.vmem %s1022_s12, 4096  ;;  %p1024_p8 = scmp.lt.s32.totalorder %s1424_s11, %s1022_s12 }
  0x40   : > { %263 = vadd.xlane.f32.xlu0 %v262_v11  ;;  %v913_v41 = vpack.c.bf16 %v320_v40, %v319_v39  ;;  %v322_v43 = vld [vmem:[%s1472_s0 + $0x38] sm:$0xff]  ;;  %v341_v56 = vsub.s32 %v338_v52, %v1349_v55  ;;  %v359_v3 = vadd.s32 4294967264, %v333_v51  ;;  %v366_v11 = vadd.s32 4294967256, %v333_v51  ;;  %p1019_p12 = pnand %p1018_p6, %p1484_p11  ;;  %p1025_p10 = scmp.lt.s32.totalorder %s1023_s14, %s1017_s28 }
  0x41   : > { %908 = vmatpush3.bf16.msra.mxu0 %v907_v34  ;;  %920 = vmatpush3.bf16.msra.mxu1 %v907_v34  ;;  %v916_v44 = vpack.c.bf16 %v322_v43, %v321_v42  ;;  %v380_v33 = vadd.s32 4294967240, %v333_v51  ;;  %vm371_vm5 = vcmask 392512   ;;  %vm378_vm6 = vcmask 458112  }
  0x42   : > { %909 = vmatprep.subr.bf16.mxu0 %v1088_v35  ;;  %921 = vmatprep.subr.bf16.mxu1 %v1088_v35  ;;  %vm385_vm7 = vcmask 523712   ;;  %vm387_vm8 = vcmask 523264   ;;  %vm589_vm9 = vcmask 1043456   ;;  %vm585_vm10 = vcmask 31744   ;;  %p1020_p13 = pneg %p1019_p12  ;;  %p1026_p0 = por %p1025_p10, %p1024_p8 }
  0x43   : > { %295 = vmax.xlane.f32.xlu1 %v294_v12  ;;  %v348_v12 = vsub.s32 %v345_v59, %v1349_v55 }
  0x44   : > { %292 = vmax.xlane.f32.xlu0 %v291_v13  ;;  %p1027_p2 = pnand %p1026_p0, %p1020_p13 }
  0x45   : > { %911 = vmatpush3.bf16.msra.mxu0 %v910_v38  ;;  %923 = vmatpush3.bf16.msra.mxu1 %v910_v38 }
  0x46   : > { %912 = vmatprep.subr.bf16.mxu0 %v1088_v35  ;;  %924 = vmatprep.subr.bf16.mxu1 %v1088_v35 }
  0x47   : > { %298 = vmax.xlane.f32.xlu1 %v297_v16 }
  0x48   : > { %272 = vadd.xlane.f32.xlu0 %v271_v17  ;;  %v373_v17 = vadd.s32 4294967248, %v333_v51 }
  0x49   : > { %914 = vmatpush3.bf16.msra.mxu0 %v913_v41  ;;  %926 = vmatpush3.bf16.msra.mxu1 %v913_v41 }
  0x4a   : > { %915 = vmatprep.subr.bf16.mxu0 %v1088_v35  ;;  %927 = vmatprep.subr.bf16.mxu1 %v1088_v35  ;;  %v376_v35 = vsub.s32 %v373_v17, %v1349_v55 }
  0x4b   : > { %301 = vmax.xlane.f32.xlu1 %v300_v20 }
  0x4c   : > { %275 = vadd.xlane.f32.xlu0 %v274_v21  ;;  %v355_v21 = vsub.s32 %v352_v63, %v1349_v55 }
  0x4d   : > { %917 = vmatpush3.bf16.msra.mxu0 %v916_v44  ;;  %929 = vmatpush3.bf16.msra.mxu1 %v916_v44 }
  0x4e   : > { %901 = vmatprep.subr.mxu0 %v1090_v45 }
  0x4f   : > { %304 = vmax.xlane.f32.xlu1 %v303_v24 }
  0x50   : > { %278 = vadd.xlane.f32.xlu0 %v277_v25  ;;  %v362_v25 = vsub.s32 %v359_v3, %v1349_v55 }
  0x53   : > { %307 = vmax.xlane.f32.xlu1 %v306_v28 }
  0x54   : > { %281 = vadd.xlane.f32.xlu0 %v280_v29 }
  0x57   : > { %313 = vmax.xlane.f32.xlu1 %v312_v30  ;;  %v369_v30 = vsub.s32 %v366_v11, %v1349_v55 }
  0x58   : > { %310 = vmax.xlane.f32.xlu0 %v309_v31 }
  0xc8   : > { %v267_v46 = vpop.xlane.xlu1 %266 }
  0xc9   : > { %v261_v47 = vpop.xlane.xlu0 %260  ;;  %v285_v13 = vmul.f32 0.00390625, %v267_v46 }
  0xca   : > { %v283_v62 = vmul.f32 0.00390625, %v261_v47  ;;  %v383_v47 = vsub.s32 %v380_v33, %v1349_v55 }
  0xcb   : > { %v349_v34 = vrot.slane %v285_v13, %v348_v12 }
  0xcc   : > { %v270_v49 = vpop.xlane.xlu1 %269  ;;  %v337_v20 = vrot.slane %v283_v62, %v336_v61 }
  0xcd   : > { %v264_v50 = vpop.xlane.xlu0 %263  ;;  %v286_v24 = vmul.f32 0.00390625, %v270_v49 }
  0xce   : > { %v284_v57 = vmul.f32 0.00390625, %v264_v50 }
  0xcf   : > { %v356_v37 = vrot.slane %v286_v24, %v355_v21 }
  0xd0   : > { %v296_v53 = vpop.xlane.xlu1 %295  ;;  %v342_v7 = vrot.slane %v284_v57, %v341_v56 }
  0xd1   : > { %v293_v54 = vpop.xlane.xlu0 %292  ;;  %v476_v39 = vrot.slane %v296_v53, %v341_v56 }
  0xd2   : > { %v344_v29 = vsel %vm343_vm1, %v342_v7, %v337_v20  ;;  %v472_v40 = vrot.slane %v293_v54, %v336_v61  ;;  %v582_v20 = vld [vmem:[%s1474_s2] sm:$0xf] }
  0xd3   : > { %v351_v41 = vsel %vm350_vm2, %v349_v34, %v344_v29  ;;  %v583_v34 = vld [vmem:[%s1475_s3] sm:$0x1] }
  0xd4   : > { %v299_v58 = vpop.xlane.xlu1 %298  ;;  %v358_v51 = vsel %vm357_vm3, %v356_v37, %v351_v41  ;;  %v477_v53 = vsel %vm343_vm1, %v476_v39, %v472_v40 }
  0xd5   : > { %v273_v60 = vpop.xlane.xlu0 %272  ;;  %v481_v43 = vrot.slane %v299_v58, %v348_v12 }
  0xd6   : > { %v287_v28 = vmul.f32 0.00390625, %v273_v60 }
  0xd7   : > { %v482_v58 = vsel %vm350_vm2, %v481_v43, %v477_v53  ;;  %v671_v43 = vsub.s32 0, %v1349_v55 }
  0xd8   : > { %v302_v10 = vpop.xlane.xlu1 %301  ;;  %v363_v42 = vrot.slane %v287_v28, %v362_v25 }
  0xd9   : > { %v276_v16 = vpop.xlane.xlu0 %275  ;;  %v486_v48 = vrot.slane %v302_v10, %v355_v21  ;;  %v323_v21 = vld [vmem:[%s1473_s1] sm:$0x1] }
  0xda   : > { %v288_v31 = vmul.f32 0.00390625, %v276_v16  ;;  %v365_v54 = vsel %vm364_vm4, %v363_v42, %v358_v51 }
  0xdb   : > { %v487_v62 = vsel %vm357_vm3, %v486_v48, %v482_v58 }
  0xdc   : > { %v305_v32 = vpop.xlane.xlu1 %304  ;;  %v370_v44 = vrot.slane %v288_v31, %v369_v30 }
  0xdd   : > { %v279_v36 = vpop.xlane.xlu0 %278  ;;  %v491_v52 = vrot.slane %v305_v32, %v362_v25 }
  0xde   : > { %v289_v38 = vmul.f32 0.00390625, %v279_v36  ;;  %v372_v59 = vsel %vm371_vm5, %v370_v44, %v365_v54 }
  0xdf   : > { %v492_v10 = vsel %vm364_vm4, %v491_v52, %v487_v62 }
  0xe0   : > { %v308_v46 = vpop.xlane.xlu1 %307  ;;  %v377_v49 = vrot.slane %v289_v38, %v376_v35 }
  0xe1   : > { %v282_v50 = vpop.xlane.xlu0 %281  ;;  %v496_v56 = vrot.slane %v308_v46, %v369_v30 }
  0xe2   : > { %v290_v57 = vmul.f32 0.00390625, %v282_v50  ;;  %v379_v7 = vsel %vm378_vm6, %v377_v49, %v372_v59 }
  0xe3   : > { %v497_v13 = vsel %vm371_vm5, %v496_v56, %v492_v10 }
  0xe4   : > { %v384_v60 = vrot.slane %v290_v57, %v383_v47  ;;  %v314_v61 = vpop.xlane.xlu1 %313 }
  0xe5   : > { %v311_v63 = vpop.xlane.xlu0 %310  ;;  %v506_v3 = vrot.slane %v314_v61, %v383_v47 }
  0xe6   : > { %v501_v11 = vrot.slane %v311_v63, %v376_v35  ;;  %v386_v12 = vsel %vm385_vm7, %v384_v60, %v379_v7  ;;  %v584_v35 = vmul.f32 2.0, %v583_v34 }
  0xe7   : > { %880 = vmatmul.mubr.msk.f32.vlgmr.msra.gmra.mrb[0].mxu0 %vm387_vm8, %v386_v12 }
  0xe8   : > { %v502_v16 = vsel %vm378_vm6, %v501_v11, %v497_v13  ;;  %903 = vmatprep.mubr.msk.f32.mxu0 %vm1089_vm0, %v1090_v45  ;;  %902 = vmatpush3.msk.msra.mxu0 %vm589_vm9, %v582_v20 }
  0xe9   : > { %v507_v17 = vsel %vm385_vm7, %v506_v3, %v502_v16 }
  0xea   : > { %899 = vmatmul.mubr.msk.f32.vlgmr.msra.gmra.mrb[0].mxu1 %vm387_vm8, %v507_v17 }
 0x1ba   : > { %v456_v24 = vpop.f32.mrb[0].mxu0 }
 0x1bb   : > { %v881_v25 = vpop.f32.mrb[1].mxu0  ;;  %v457_v28 = vadd.f32 %v456_v24, %v323_v21 }
 0x1bd   : > { %v576_v29 = vpop.f32.mrb[0].mxu1  ;;  %v460_v45 = vmax.f32 %v457_v28, 0.0 }
 0x1be   : > { %v577_v30 = vadd.f32 %v576_v29, %v323_v21  ;;  %v900_v31 = vpop.f32.mrb[1].mxu1 }
 0x1c0   : > { %v580_v32 = vmax.f32 %v577_v30, 0.0 }
 0x1c2   : > { %v581_v33 = vadd.f32 %v580_v32, %v460_v45 }
 0x1c4   : > { %904 = vmatmul.mubr.msk.f32.vlgmr.msra.gmra.mrb[2].mxu0 %vm585_vm10, %v581_v33 }
 0x297   : > { %v659_v36 = vpop.f32.mrb[2].mxu0 }
 0x298   : > { %v660_v37 = vadd.f32 %v659_v36, %v584_v35  ;;  %v905_v38 = vpop.f32.mrb[3].mxu0 }
 0x29a   : > { %v663_v39 = vsub.f32 0.0, %v660_v37 }
 0x29c   : > { %v664_v40 = vmul.f32 1.442695, %v663_v39 }
 0x29e   : > { %983 = vpow2.f32 %v664_v40 }
 0x2a8   : > { %v984_v41 = vpop.eup %983 }
 0x2a9   : > { %v666_v42 = vadd.f32 1.0, %v984_v41 }
 0x2ab   : > { %985 = vrcp.f32 %v666_v42 }
 0x2b5   : > { %v986_v44 = vpop.eup %985 }
 0x2b6   : > { %v672_v46 = vrot.slane %v986_v44, %v671_v43 }
 0x2b8   : > { %678 = vbcast.lane.b32.xlu1 %v672_v46, 264  ;;  %674 = vbcast.lane.b32.xlu0 %v672_v46, 256 }
 0x2bc   : > { %682 = vbcast.lane.b32.xlu1 %v672_v46, 272  ;;  %690 = vbcast.lane.b32.xlu0 %v672_v46, 288 }
 0x2c0   : > { %686 = vbcast.lane.b32.xlu1 %v672_v46, 280  ;;  %698 = vbcast.lane.b32.xlu0 %v672_v46, 304 }
 0x2c4   : > { %694 = vbcast.lane.b32.xlu1 %v672_v46, 296 }
 0x2c8   : > { %702 = vbcast.lane.b32.xlu1 %v672_v46, 312 }
 0x32a   : > { %v679_v47 = vpop.permute.xlu1 %678  ;;  %v675_v48 = vpop.permute.xlu0 %674 }
 0x32b   : > { %v706_v49 = vmul.f32 %v679_v47, %v1263_v8  ;;  %v707_v50 = vmul.f32 %v679_v47, %v1266_v9  ;;  %v704_v51 = vmul.f32 %v675_v48, %v1247_v2  ;;  %v705_v55 = vmul.f32 %v675_v48, %v1252_v4 }
 0x32d   : > { %722 = vst [vmem:[%s1391_s10 + $0x10] sm:$0xff] %v706_v49  ;;  %723 = vst [vmem:[%s1391_s10 + $0x18] sm:$0xff] %v707_v50 }
 0x32e   : > { %720 = vst [vmem:[%s1391_s10] sm:$0xff] %v704_v51  ;;  %721 = vst [vmem:[%s1391_s10 + $0x8] sm:$0xff] %v705_v55  ;;  %v683_v8 = vpop.permute.xlu1 %682  ;;  %v691_v2 = vpop.permute.xlu0 %690 }
 0x32f   : > { %v708_v4 = vmul.f32 %v683_v8, %v1241_v0  ;;  %v709_v9 = vmul.f32 %v683_v8, %v1244_v1  ;;  %v712_v52 = vmul.f32 %v691_v2, %v1277_v14  ;;  %v713_v57 = vmul.f32 %v691_v2, %v1280_v15 }
 0x331   : > { %724 = vst [vmem:[%s1391_s10 + $0x20] sm:$0xff] %v708_v4  ;;  %725 = vst [vmem:[%s1391_s10 + $0x28] sm:$0xff] %v709_v9 }
 0x332   : > { %728 = vst [vmem:[%s1391_s10 + $0x40] sm:$0xff] %v712_v52  ;;  %729 = vst [vmem:[%s1391_s10 + $0x48] sm:$0xff] %v713_v57  ;;  %v687_v53 = vpop.permute.xlu1 %686  ;;  %v699_v54 = vpop.permute.xlu0 %698 }
 0x333   : > { %v710_v0 = vmul.f32 %v687_v53, %v1255_v5  ;;  %v711_v56 = vmul.f32 %v687_v53, %v1258_v6  ;;  %v716_v1 = vmul.f32 %v699_v54, %v1297_v22  ;;  %v717_v14 = vmul.f32 %v699_v54, %v1300_v23 }
 0x335   : > { %726 = vst [vmem:[%s1391_s10 + $0x30] sm:$0xff] %v710_v0  ;;  %727 = vst [vmem:[%s1391_s10 + $0x38] sm:$0xff] %v711_v56 }
 0x336   : > { %732 = vst [vmem:[%s1391_s10 + $0x60] sm:$0xff] %v716_v1  ;;  %733 = vst [vmem:[%s1391_s10 + $0x68] sm:$0xff] %v717_v14  ;;  %v695_v15 = vpop.permute.xlu1 %694 }
 0x337   : > { %v714_v58 = vmul.f32 %v695_v15, %v1287_v18  ;;  %v715_v59 = vmul.f32 %v695_v15, %v1290_v19 }
 0x339   : > { %730 = vst [vmem:[%s1391_s10 + $0x50] sm:$0xff] %v714_v58  ;;  %731 = vst [vmem:[%s1391_s10 + $0x58] sm:$0xff] %v715_v59 }
 0x33a   : > { %v703_v5 = vpop.permute.xlu1 %702 }
 0x33b   : > { %v718_v6 = vmul.f32 %v703_v5, %v1307_v26  ;;  %v719_v18 = vmul.f32 %v703_v5, %v1310_v27 }
 0x33d   : > { %734 = vst [vmem:[%s1391_s10 + $0x70] sm:$0xff] %v718_v6  ;;  %735 = vst [vmem:[%s1391_s10 + $0x78] sm:$0xff] %v719_v18 }
 0x33e   : > { %1030 = shalt.err (!%p1027_p2)
}
 0x33f   : > { %s1031_s15 = scalar_lea.hbm %s1422_s26, 2048  ;;  %s1035_s7 = scalar_lea.hbm %s1477_s5, 4096 }
 0x340   : > { %p1032_p4 = scmp.ne.s32.totalorder %s1422_s26, %s1031_s15  ;;  %p1036_p9 = scmp.lt.u32.totalorder %s1422_s26, %s1477_s5 }
 0x341   : > { %p1037_p1 = scmp.lt.u32.totalorder %s1035_s7, %s1031_s15  ;;  %p1039_p6 = scmp.lt.u32.totalorder %s1031_s15, %s1422_s26 }
 0x342   : > { %p1033_p5 = pnand %p1032_p4, %p1484_p11 }
 0x343   : > { %p1038_p3 = por %p1037_p1, %p1036_p9 }
 0x344   : > { %p1034_p7 = pneg %p1033_p5 }
 0x345   : > { %p1040_p12 = por %p1039_p6, %p1038_p3 }
 0x347   : > { %p1041_p13 = pnand %p1040_p12, %p1034_p7 }
 0x349   : > { %1044 = shalt.err (!%p1041_p13)
}
 0x34a   : > { %s1092_s25 = smov 256   ;;  %s1093_s13 = smov 16  }
 0x34b   : > { %932 = dma.vmem_to_hbm [thread:$0]  (%p1484_p11), %s1424_s11, 2048, %s1422_s26, %s737_s22, %s1092_s25, %s1092_s25, %s1093_s13  }
 0x34c PF: > { %s765_s17 = sand.u32 1, %s1071_s18   ;;  %p1485_p8 = scmp.ne.s32.totalorder %s1482_s6, 0 }
 0x34d   : > { %p1486_p10 = scmp.ge.s32.totalorder %s1083_s21, 2  ;;  %s766_s28 = scalar_lea.sflag [#allocation4], %s765_s17 }
 0x34f   : > { %p939_p0 = pnand %p1486_p10, %p1485_p8 }
 0x351   : > { %1066 = dma.done.wait (!%p939_p0), %s766_s28, 2048  }
 0x352   : > { %1068 = vsyncadd (!%p939_p0), %s766_s28, 4294965248  ;;  %p18_p2 = scmp.ge.s32.totalorder %s1149_s24, 4   ;;  %s1487_s18 = smov %s1075_s19 }
 0x353   : > { %s1488_s19 = smov %s1079_s20  ;;  %s1489_s20 = smov %s1161_s27 }
 0x354   : > { %s1490_s21 = smov %s1149_s24  ;;  %20 = sbr.rel (!%p18_p2) target bundleno = 5 (0x5), region = 85 }
 0x35b   :  { %771 = vsyncpa [#allocation3], 1 }
 0x35c   :  { %773 = vsyncpa [#allocation3 + $0x1], 1 }
 0x35d   :  { %774 = vsyncpa [#allocation4], 1 }
 0x35e   :  { %776 = vsyncpa [#allocation4 + $0x1], 1 }

</bundles_post_ra>
